<compile_context>
chip_gen: v5e
topology: v5e:2x2
jax: 0.10.0
libtpu: 0.0.40
codegen_flags: <defaults>
</compile_context>

<pallas_src>
import jax
import jax.numpy as jnp
from jax.experimental import pallas as pl
from jax.experimental.pallas import tpu as pltpu

_LN_EPS = 1e-5  # nn.LayerNorm default eps


def _ln_residual_kernel(x_ref, gamma_ref, beta_ref, o_ref):
    """LayerNorm over channels (axis 1) + residual add, native (N, C, S) layout.

    x_ref:     (1, C, TS)  one batch element, one spatial tile (lane-dense in S)
    gamma_ref: (C, 1)      layer_norm_1.weight
    beta_ref:  (C, 1)      layer_norm_1.bias
    o_ref:     (1, C, TS)  LN(x) + x
    """
    x = x_ref[...].astype(jnp.float32)                     # (1, C, TS)
    c = x.shape[1]
    inv_c = jnp.float32(1.0 / c)

    # One-pass statistics over the channel axis (biased variance, as torch).
    s1 = jnp.sum(x, axis=1, keepdims=True)                 # (1, 1, TS)
    s2 = jnp.sum(x * x, axis=1, keepdims=True)             # (1, 1, TS)
    mean = s1 * inv_c
    var = jnp.maximum(s2 * inv_c - mean * mean, 0.0)
    inv = jax.lax.rsqrt(var + _LN_EPS)

    gamma = gamma_ref[...].astype(jnp.float32)[None]       # (1, C, 1)
    beta = beta_ref[...].astype(jnp.float32)[None]         # (1, C, 1)

    y = (x - mean) * inv * gamma + beta                    # LayerNorm_1(x)
    o_ref[...] = (y + x).astype(o_ref.dtype)               # + residue


def _pick_tile_s(s, c, itemsize):
    """Largest lane-dense spatial tile (multiple of 128) dividing S, capped so
    a single (1, C, TILE_S) buffer stays around <= 2 MiB (safe on all gens)."""
    budget = 2 * 1024 * 1024
    max_t = (budget // max(1, c * itemsize)) // 128 * 128
    for t in (2048, 1024, 512, 256, 128):
        if t <= max_t and s % t == 0:
            return t
    return s  # fallback: full spatial extent (block dim == array dim is legal)


def unet_attention_forward(x_nchw, gamma, beta):
    """Exact forward of UNET_Attention (see dead-code note above).

    x_nchw: (N, C, H, W) float32
    gamma, beta: (C,) layer_norm_1 parameters
    """
    n, c, h, w = x_nchw.shape
    s = h * w

    # NCHW -> (N, C, S) is a contiguous reshape: zero HBM data movement.
    x_ncs = x_nchw.reshape(n, c, s)
    gamma_c1 = gamma.reshape(c, 1)
    beta_c1 = beta.reshape(c, 1)

    ts = _pick_tile_s(s, c, jnp.dtype(x_nchw.dtype).itemsize)
    grid = (n, s // ts)

    out_ncs = pl.pallas_call(
        _ln_residual_kernel,
        out_shape=jax.ShapeDtypeStruct((n, c, s), x_nchw.dtype),
        grid_spec=pltpu.PrefetchScalarGridSpec(
            num_scalar_prefetch=0,
            grid=grid,
            in_specs=[
                pl.BlockSpec((1, c, ts), lambda i, j: (i, 0, j)),
                pl.BlockSpec((c, 1), lambda i, j: (0, 0)),
                pl.BlockSpec((c, 1), lambda i, j: (0, 0)),
            ],
            out_specs=pl.BlockSpec((1, c, ts), lambda i, j: (i, 0, j)),
        ),
        compiler_params=pltpu.CompilerParams(
            dimension_semantics=("parallel", "parallel"),
        ),
    )(x_ncs, gamma_c1, beta_c1)

    # (N, C, S) -> NCHW is again a free contiguous reshape.
    return out_ncs.reshape(n, c, h, w)


def _reference_forward(x_nchw, gamma, beta):
    """Pure-JAX reference matching the PyTorch forward exactly."""
    n, c, h, w = x_nchw.shape
    residue = x_nchw
    xs = jnp.transpose(x_nchw.reshape(n, c, h * w), (0, 2, 1))  # (n, hw, c)
    mean = jnp.mean(xs, axis=-1, keepdims=True)
    var = jnp.mean((xs - mean) ** 2, axis=-1, keepdims=True)
    xs_ln = (xs - mean) / jnp.sqrt(var + _LN_EPS) * gamma + beta
    # attention / layer_norm_2 / linear_1+GELU branch is dead code in the
    # reference forward (its result is overwritten by `out = x.transpose(...)`).
    out = jnp.transpose(xs_ln, (0, 2, 1)).reshape(n, c, h, w)
    return out + residue


if __name__ == "__main__":
    # Module config: n_heads=2, emb_dim=16 -> channels = 32.
    # Spatial 16x16 -> S = 256 (lane-dense, multiple of 128).
    n_heads, emb_dim = 2, 16
    channels = n_heads * emb_dim
    batch, hgt, wid = 2, 16, 16

    key = jax.random.PRNGKey(0)
    kx, kg, kb = jax.random.split(key, 3)
    x = jax.random.normal(kx, (batch, channels, hgt, wid), dtype=jnp.float32)
    # layer_norm_1 parameters (random affine to exercise the gamma/beta path).
    gamma = 1.0 + 0.1 * jax.random.normal(kg, (channels,), dtype=jnp.float32)
    beta = 0.1 * jax.random.normal(kb, (channels,), dtype=jnp.float32)

    # TODO(synk): MultiHeadAttention / layer_norm_2 / linear_1+GELU are dead
    # code in the reference forward (their result is overwritten), so they are
    # not translated.

    out = unet_attention_forward(x, gamma, beta)
    out = jax.block_until_ready(out)

    ref = _reference_forward(x, gamma, beta)
    assert out.shape == (batch, channels, hgt, wid)
    assert jnp.allclose(out, ref, atol=1e-5, rtol=1e-5), "mismatch vs reference"

    print("KERNEL_OK")
</pallas_src>

<mosaic_0001>
module attributes {stable_mosaic.version = 11 : i64} {
  func.func @_ln_residual_kernel(%arg0: i32, %arg1: i32, %arg2: memref<1x32x256xf32, #tpu.memory_space<vmem>>, %arg3: memref<32x1xf32, #tpu.memory_space<vmem>>, %arg4: memref<32x1xf32, #tpu.memory_space<vmem>>, %arg5: memref<1x32x256xf32, #tpu.memory_space<vmem>>) attributes {dimension_semantics = [#tpu.dimension_semantics<parallel>, #tpu.dimension_semantics<parallel>], iteration_bounds = array<i64: 2, 1>, scalar_prefetch = 0 : i64, scratch_operands = 0 : i64, tpu.core_type = #tpu.core_type<tc>, window_params = [{transform_indices = @transform_0, window_bounds = array<i64: 1, 32, 256>}, {pipeline_mode = #tpu.pipeline_mode<synchronous>, transform_indices = @transform_1, window_bounds = array<i64: 32, 1>}, {pipeline_mode = #tpu.pipeline_mode<synchronous>, transform_indices = @transform_2, window_bounds = array<i64: 32, 1>}, {transform_indices = @transform_3, window_bounds = array<i64: 1, 32, 256>}]} {
    %c0 = arith.constant 0 : index
    %c0_0 = arith.constant 0 : index
    %c0_1 = arith.constant 0 : index
    %0 = vector.load %arg2[%c0, %c0_0, %c0_1] : memref<1x32x256xf32, #tpu.memory_space<vmem>>, vector<1x32x256xf32>
    %cst = arith.constant dense<0.000000e+00> : vector<1x256xf32>
    %1 = vector.multi_reduction <add>, %0, %cst [1] : vector<1x32x256xf32> to vector<1x256xf32>
    %2 = vector.shape_cast %1 : vector<1x256xf32> to vector<1x1x256xf32>
    %3 = arith.mulf %0, %0 : vector<1x32x256xf32>
    %cst_2 = arith.constant dense<0.000000e+00> : vector<1x256xf32>
    %4 = vector.multi_reduction <add>, %3, %cst_2 [1] : vector<1x32x256xf32> to vector<1x256xf32>
    %5 = vector.shape_cast %4 : vector<1x256xf32> to vector<1x1x256xf32>
    %cst_3 = arith.constant 3.125000e-02 : f32
    %6 = vector.broadcast %cst_3 : f32 to vector<1x1x256xf32>
    %7 = arith.mulf %2, %6 : vector<1x1x256xf32>
    %cst_4 = arith.constant 3.125000e-02 : f32
    %8 = vector.broadcast %cst_4 : f32 to vector<1x1x256xf32>
    %9 = arith.mulf %5, %8 : vector<1x1x256xf32>
    %10 = arith.mulf %7, %7 : vector<1x1x256xf32>
    %11 = arith.subf %9, %10 : vector<1x1x256xf32>
    %cst_5 = arith.constant 0.000000e+00 : f32
    %12 = vector.broadcast %cst_5 : f32 to vector<1x1x256xf32>
    %13 = arith.maximumf %11, %12 : vector<1x1x256xf32>
    %cst_6 = arith.constant 9.99999974E-6 : f32
    %14 = vector.broadcast %cst_6 : f32 to vector<1x1x256xf32>
    %15 = arith.addf %13, %14 : vector<1x1x256xf32>
    %16 = math.rsqrt %15 : vector<1x1x256xf32>
    %c0_7 = arith.constant 0 : index
    %c0_8 = arith.constant 0 : index
    %17 = vector.load %arg3[%c0_7, %c0_8] : memref<32x1xf32, #tpu.memory_space<vmem>>, vector<32x1xf32>
    %18 = vector.shape_cast %17 : vector<32x1xf32> to vector<1x32x1xf32>
    %c0_9 = arith.constant 0 : index
    %c0_10 = arith.constant 0 : index
    %19 = vector.load %arg4[%c0_9, %c0_10] : memref<32x1xf32, #tpu.memory_space<vmem>>, vector<32x1xf32>
    %20 = vector.shape_cast %19 : vector<32x1xf32> to vector<1x32x1xf32>
    %21 = vector.broadcast %7 : vector<1x1x256xf32> to vector<1x32x256xf32>
    %22 = arith.subf %0, %21 : vector<1x32x256xf32>
    %23 = vector.broadcast %16 : vector<1x1x256xf32> to vector<1x32x256xf32>
    %24 = arith.mulf %22, %23 : vector<1x32x256xf32>
    %25 = vector.broadcast %18 : vector<1x32x1xf32> to vector<1x32x256xf32>
    %26 = arith.mulf %24, %25 : vector<1x32x256xf32>
    %27 = vector.broadcast %20 : vector<1x32x1xf32> to vector<1x32x256xf32>
    %28 = arith.addf %26, %27 : vector<1x32x256xf32>
    %29 = arith.addf %28, %0 : vector<1x32x256xf32>
    %c0_11 = arith.constant 0 : index
    %c0_12 = arith.constant 0 : index
    %c0_13 = arith.constant 0 : index
    %30 = vector.load %arg5[%c0_11, %c0_12, %c0_13] : memref<1x32x256xf32, #tpu.memory_space<vmem>>, vector<1x32x256xf32>
    tpu.vector_store %arg5[%c0_11, %c0_12, %c0_13], %29 {strides = array<i32>} : memref<1x32x256xf32, #tpu.memory_space<vmem>>, vector<1x32x256xf32>,
    return
  }
  func.func @transform_0(%arg0: i32, %arg1: i32) -> (i32, i32, i32) {
    %c0_i32 = arith.constant 0 : i32
    %c0_i32_0 = arith.constant 0 : i32
    return %arg0, %c0_i32, %arg1 : i32, i32, i32
  }
  func.func @transform_1(%arg0: i32, %arg1: i32) -> (i32, i32) {
    %c0_i32 = arith.constant 0 : i32
    %c0_i32_0 = arith.constant 0 : i32
    %c0_i32_1 = arith.constant 0 : i32
    return %c0_i32, %c0_i32_0 : i32, i32
  }
  func.func @transform_2(%arg0: i32, %arg1: i32) -> (i32, i32) {
    %c0_i32 = arith.constant 0 : i32
    %c0_i32_0 = arith.constant 0 : i32
    %c0_i32_1 = arith.constant 0 : i32
    return %c0_i32, %c0_i32_0 : i32, i32
  }
  func.func @transform_3(%arg0: i32, %arg1: i32) -> (i32, i32, i32) {
    %c0_i32 = arith.constant 0 : i32
    %c0_i32_0 = arith.constant 0 : i32
    return %arg0, %c0_i32, %arg1 : i32, i32, i32
  }
}

</mosaic_0001>

<bundles_post_ra>
// kernel: tpu_custom_call.1
= control target key start
LH: loop header
LB: loop body
LE: loop exit
PB: predicated region body
PF: predicated region fallthrough
CT: control target
= control target key end

     0   :  { %8 = vsyncpa [#allocation3], 0  ;;  %s967_s0 = inlined_call_operand.hbm [shape: f32[2,32,256], index: 0, kind: input, shape index: {}]   ;;  %s968_s1 = inlined_call_operand.vmem [shape: f32[32,1], index: 1, kind: input, shape index: {}]   ;;  %s969_s2 = inlined_call_operand.vmem [shape: f32[32,1], index: 2, kind: input, shape index: {}]   ;;  %s970_s3 = inlined_call_operand.hbm [shape: f32[2,32,256], index: 3, kind: output, shape index: {}]  }
   0x1   :  { %10 = vsyncpa [#allocation3 + $0x1], 0 }
   0x2   :  { %11 = vsyncpa [#allocation4], 0 }
   0x3   :  { %13 = vsyncpa [#allocation4 + $0x1], 0  ;;  %s726_s12 = smov 0   ;;  %s728_s13 = smov 0  }
   0x4   :  { %s730_s14 = smov 0   ;;  %s732_s15 = smov 0  }
   0x5   :  { %s734_s16 = smov 0   ;;  %s736_s17 = smov 0  }
   0x6 LB: > { %s496_s18 = sadd.s32 4294967295, %s699_s17   ;;  %s497_s19 = sadd.s32 4294967294, %s699_s17   ;;  %s699_s17 = sphi %s736_s17, %s19_s17   ;;  %s695_s16 = sphi %s734_s16, %s979_s16   ;;  %s691_s15 = sphi %s732_s15, %s978_s15   ;;  %s687_s14 = sphi %s730_s14, %s977_s14   ;;  %s683_s13 = sphi %s728_s13, %s976_s13   ;;  %s679_s12 = sphi %s726_s12, %s975_s12  }
   0x7   : > { %s31_s20 = sadd.s32 1, %s695_s16  ;;  %s40_s21 = sadd.s32 1, %s687_s14 }
   0x8   : > { %p33_p0 = scmp.ge.s32.totalorder %s31_s20, 2  ;;  %p47_p1 = scmp.ne.s32.totalorder %s687_s14, %s683_s13 }
   0x9   : > { %p48_p2 = scmp.eq.s32.totalorder %s699_s17, 0  ;;  %p53_p3 = scmp.ne.s32.totalorder %s683_s13, %s679_s12 }
   0xa   : > { %s981_s20 = smov (%p33_p0, %s31_s20), 0  ;;  %p54_p5 = scmp.eq.s32.totalorder %s496_s18, 0 }
   0xb   : > { %p767_p4 = por %p48_p2, %p47_p1  ;;  %s35_s23 = ssub.s32 %s695_s16, %s981_s20 }
   0xc   : > { %p121_p6 = scmp.eq.s32.totalorder %s496_s18, 1  ;;  %p38_p7 = scmp.eq.s32.totalorder %s35_s23, 0 }
   0xd   : > { %p773_p8 = por %p54_p5, %p53_p3  ;;  %p127_p10 = scmp.eq.s32.totalorder %s497_s19, 1 }
   0xe   : > { %p777_p9 = por %p121_p6, %p47_p1  ;;  %p499_p12 = scmp.ge.s32.totalorder %s699_s17, 2 }
   0xf   : > { %s782_s26 = scalar_select %p38_p7, %s687_s14, %s40_s21  }
  0x10   : > { %p784_p11 = por %p127_p10, %p53_p3  ;;  %p525_p13 = scmp.lt.s32.totalorder %s699_s17, 2 }
  0x11   : > { %s153_s28 = sand.u32 1, %s687_s14   ;;  %s511_s30 = sshll.u32 %s695_s16, 6 }
  0x12   : > { %s500_s29 = sshll.u32 %s153_s28, 6  ;;  %s164_s6 = scalar_lea.hbm %s967_s0, %s511_s30 }
  0x13   : > { %s157_s7 = scalar_lea.vmem [#allocation2], %s500_s29  ;;  %s165_s9 = sshll.u32 %s164_s6, 4  ;;  %s166_s9 = int_to_ptr.hbm [resolvable:$true] %s165_s9 }
  0x14   : > { %s167_s8 = sshll.u32 %s157_s7, 4  ;;  %p518_p0 = pnand %p525_p13, %p767_p4  ;;  %s168_s8 = int_to_ptr.vmem [resolvable:$true] %s167_s8 }
  0x15   : > { %p503_p1 = scmp.ge.s32.totalorder %s699_s17, 1  ;;  %s154_s10 = scalar_lea.sflag [#allocation3], %s153_s28 }
  0x16   : > { %s701_s11 = smov 256   ;;  %s702_s18 = smov 16  }
  0x17   : > { %520 = dma.hbm_to_vmem [thread:$0]  (!%p518_p0), %s166_s9, 1024, %s168_s8, %s154_s10, %s701_s11, %s701_s11, %s702_s18  }
  0x18   : > { %p175_p2 = scmp.lt.s32.totalorder %s699_s17, 3 }
  0x1a   : > { %p176_p3 = pnand %p503_p1, %p175_p2 }
  0x1b   : > { %s800_s19 = sand.u32 (!%p176_p3), 1, %s683_s13  }
  0x1c   : > { %179 = sbr.rel (%p176_p3) target bundleno = 178 (0xb2), region = 32  ;;  %s504_s21 = sshll.u32 (!%p176_p3), %s800_s19, 6 }
  0x1d   : > { %s182_s23 = scalar_lea.sflag (!%p176_p3), [#allocation3], %s800_s19  ;;  %s806_s22 = scalar_lea.vmem (!%p176_p3), [#allocation2], %s504_s21 }
  0x21   : > { %670 = dma.done.wait (%p773_p8), %s182_s23, 1024  }
  0x22   : > { %672 = vsyncadd (%p773_p8), %s182_s23, 4294966272  ;;  %v703_v0 = vmov 0   ;;  %v297_v1 = vld [vmem:[%s968_s1 + $0x10] sm:$0xff]  ;;  %v295_v2 = vld [vmem:[%s968_s1] sm:$0xff]  ;;  %s392_s6 = scalar_lea.sflag [#allocation4], %s800_s19  ;;  %s637_s11 = scalar_lea.hbm %s970_s3, 128 }
  0x23   : > { %581 = vset.pattern.permute.xlu1 %v703_v0  ;;  %580 = vset.pattern.permute.xlu0 %v703_v0  ;;  %v299_v3 = vld [vmem:[%s969_s2] sm:$0xff]  ;;  %v298_v4 = vld [vmem:[%s968_s1 + $0x18] sm:$0xff]  ;;  %v296_v5 = vld [vmem:[%s968_s1 + $0x8] sm:$0xff] }
  0x24   : > { %582 = vset.pattern.permute.xlu2 %v703_v0  ;;  %331 = vperm.xlu1 %581, %v297_v1   ;;  %v300_v6 = vld [vmem:[%s969_s2 + $0x8] sm:$0xff]  ;;  %v302_v7 = vld [vmem:[%s969_s2 + $0x18] sm:$0xff]  ;;  %v301_v8 = vld [vmem:[%s969_s2 + $0x10] sm:$0xff] }
  0x25   : > { %321 = vperm.xlu0 %580, %v295_v2   ;;  %349 = vperm.xlu2 %582, %v299_v3   ;;  %v837_v9 = vld [vmem:[%s806_s22] sm:$0xff]  ;;  %v840_v10 = vld [vmem:[%s806_s22 + $0x8] sm:$0xff]  ;;  %v843_v11 = vld [vmem:[%s806_s22 + $0x10] sm:$0xff] }
  0x26   : > { %v846_v12 = vld [vmem:[%s806_s22 + $0x18] sm:$0xff]  ;;  %v219_v13 = vadd.f32 %v843_v11, %v837_v9  ;;  %v237_v14 = vmul.f32 %v837_v9, %v837_v9  ;;  %v238_v15 = vmul.f32 %v840_v10, %v840_v10  ;;  %v239_v16 = vmul.f32 %v843_v11, %v843_v11  ;;  %v857_v17 = vld [vmem:[%s806_s22 + $0x20] sm:$0xff]  ;;  %v860_v18 = vld [vmem:[%s806_s22 + $0x28] sm:$0xff] }
  0x27   : > { %v228_v19 = vadd.f32 %v846_v12, %v840_v10  ;;  %v240_v20 = vmul.f32 %v846_v12, %v846_v12  ;;  %v241_v22 = vmul.f32 %v857_v17, %v857_v17  ;;  %v242_v23 = vmul.f32 %v860_v18, %v860_v18  ;;  %v872_v25 = vld [vmem:[%s806_s22 + $0x30] sm:$0xff]  ;;  %v875_v26 = vld [vmem:[%s806_s22 + $0x38] sm:$0xff]  ;;  %s908_s22 = scalar_lea.vmem [#allocation5], %s504_s21  ;;  %s512_s21 = sshll.u32 %s691_s15, 6 }
  0x28   : > { %v220_v21 = vadd.f32 %v219_v13, %v857_v17  ;;  %v245_v24 = vadd.f32 %v239_v16, %v237_v14  ;;  %v243_v30 = vmul.f32 %v872_v25, %v872_v25  ;;  %v244_v31 = vmul.f32 %v875_v26, %v875_v26  ;;  %s405_s5 = scalar_lea.hbm %s970_s3, %s512_s21  ;;  %s406_s15 = sshll.u32 %s908_s22, 4  ;;  %s407_s15 = int_to_ptr.vmem [resolvable:$true] %s406_s15 }
  0x29   : > { %v229_v27 = vadd.f32 %v228_v19, %v860_v18  ;;  %v254_v28 = vadd.f32 %v240_v20, %v238_v15  ;;  %s408_s24 = sshll.u32 %s405_s5, 4  ;;  %s409_s24 = int_to_ptr.hbm [resolvable:$true] %s408_s24 }
  0x2a   : > { %v221_v29 = vadd.f32 %v220_v21, %v872_v25  ;;  %v246_v32 = vadd.f32 %v245_v24, %v241_v22  ;;  %s631_s7 = sshra.s32 %s409_s24, 4  ;;  %s632_s7 = int_to_ptr.hbm [resolvable:$true] %s631_s7 }
  0x2b   : > { %v230_v33 = vadd.f32 %v229_v27, %v875_v26  ;;  %v255_v34 = vadd.f32 %v254_v28, %v242_v23  ;;  %s633_s8 = scalar_lea.hbm %s632_s7, 64  ;;  %p638_p7 = scmp.lt.s32.totalorder %s632_s7, %s970_s3 }
  0x2c   : > { %336 = vperm.xlu1 %581, %v298_v4   ;;  %v222_v35 = vrot.slane %v221_v29, 4  ;;  %v247_v36 = vadd.f32 %v246_v32, %v243_v30  ;;  %p634_p4 = scmp.ne.s32.totalorder %s632_s7, %s633_s8  ;;  %p639_p8 = scmp.lt.s32.totalorder %s637_s11, %s633_s8 }
  0x2d   : > { %326 = vperm.xlu0 %580, %v296_v5   ;;  %354 = vperm.xlu2 %582, %v300_v6   ;;  %v231_v37 = vrot.slane %v230_v33, 4  ;;  %v256_v38 = vadd.f32 %v255_v34, %v244_v31 }
  0x2e   : > { %v223_v39 = vadd.f32 %v222_v35, %v221_v29  ;;  %v248_v40 = vrot.slane %v247_v36, 4  ;;  %p635_p5 = pnand %p634_p4, %p777_p9  ;;  %p640_p10 = por %p639_p8, %p638_p7 }
  0x2f   : > { %v232_v41 = vadd.f32 %v231_v37, %v230_v33  ;;  %v257_v42 = vrot.slane %v256_v38, 4 }
  0x30   : > { %v224_v43 = vrot.slane %v223_v39, 2  ;;  %v249_v44 = vadd.f32 %v248_v40, %v247_v36  ;;  %p636_p6 = pneg %p635_p5 }
  0x31   : > { %v233_v45 = vrot.slane %v232_v41, 2  ;;  %v258_v46 = vadd.f32 %v257_v42, %v256_v38 }
  0x32   : > { %v225_v47 = vadd.f32 %v224_v43, %v223_v39  ;;  %v250_v48 = vrot.slane %v249_v44, 2  ;;  %p641_p13 = pnand %p640_p10, %p636_p6 }
  0x33   : > { %v234_v49 = vadd.f32 %v233_v45, %v232_v41  ;;  %v259_v50 = vrot.slane %v258_v46, 2 }
  0x34   : > { %364 = vperm.xlu1 %581, %v302_v7   ;;  %v226_v51 = vrot.slane %v225_v47, 1  ;;  %v251_v52 = vadd.f32 %v250_v48, %v249_v44 }
  0x35   : > { %359 = vperm.xlu0 %580, %v301_v8   ;;  %v235_v53 = vrot.slane %v234_v49, 1  ;;  %v260_v54 = vadd.f32 %v259_v50, %v258_v46 }
  0x36   : > { %v227_v55 = vadd.f32 %v226_v51, %v225_v47  ;;  %v252_v56 = vrot.slane %v251_v52, 1 }
  0x37   : > { %v236_v57 = vadd.f32 %v235_v53, %v234_v49  ;;  %v261_v58 = vrot.slane %v260_v54, 1 }
  0x38   : > { %v253_v59 = vadd.f32 %v252_v56, %v251_v52  ;;  %v884_v60 = vmul.f32 0.03125, %v227_v55 }
  0x39   : > { %v262_v61 = vadd.f32 %v261_v58, %v260_v54  ;;  %v886_v62 = vmul.f32 0.03125, %v236_v57 }
  0x3a   : > { %v265_v63 = vmul.f32 0.03125, %v253_v59  ;;  %v267_v0 = vmul.f32 %v884_v60, %v884_v60  ;;  %v303_v29 = vsub.f32 %v837_v9, %v884_v60  ;;  %v305_v40 = vsub.f32 %v843_v11, %v884_v60 }
  0x3b   : > { %v266_v1 = vmul.f32 0.03125, %v262_v61  ;;  %v268_v2 = vmul.f32 %v886_v62, %v886_v62  ;;  %v304_v30 = vsub.f32 %v840_v10, %v886_v62  ;;  %v306_v41 = vsub.f32 %v846_v12, %v886_v62 }
  0x3c   : > { %v269_v3 = vsub.f32 %v265_v63, %v267_v0  ;;  %v307_v48 = vsub.f32 %v857_v17, %v884_v60  ;;  %v308_v49 = vsub.f32 %v860_v18, %v886_v62 }
  0x3d   : > { %v270_v4 = vsub.f32 %v266_v1, %v268_v2 }
  0x3e   : > { %v271_v5 = vmax.f32 %v269_v3, 0.0 }
  0x3f   : > { %v272_v6 = vmax.f32 %v270_v4, 0.0 }
  0x40   : > { %v273_v7 = vadd.f32 1e-05, %v271_v5 }
  0x41   : > { %v274_v8 = vadd.f32 1e-05, %v272_v6 }
  0x42   : > { %583 = vrsqrt.f32 %v273_v7  ;;  %vm281_vm0 = vweird.f32 %v273_v7 }
  0x43   : > { %585 = vrsqrt.f32 %v274_v8  ;;  %vm291_vm2 = vweird.f32 %v274_v8 }
  0x48   : > { %v584_v13 = vpop.eup %583 }
  0x49   : > { %v586_v14 = vpop.eup %585  ;;  %v276_v15 = vmul.f32 %v584_v13, %v273_v7  ;;  %vm282_vm1 = vweird.f32 %v584_v13 }
  0x4a   : > { %v286_v16 = vmul.f32 %v586_v14, %v274_v8  ;;  %vm292_vm3 = vweird.f32 %v586_v14  ;;  %vm283_vm4 = vmor %vm281_vm0, %vm282_vm1 }
  0x4b   : > { %v277_v19 = vmul.f32 %v584_v13, %v276_v15  ;;  %vm293_vm5 = vmor %vm291_vm2, %vm292_vm3 }
  0x4c   : > { %v287_v20 = vmul.f32 %v586_v14, %v286_v16 }
  0x4d   : > { %v278_v21 = vmul.f32 0.5, %v277_v19 }
  0x4e   : > { %v288_v22 = vmul.f32 0.5, %v287_v20 }
  0x4f   : > { %v279_v23 = vsub.f32 1.5, %v278_v21 }
  0x50   : > { %v289_v24 = vsub.f32 1.5, %v288_v22 }
  0x51   : > { %v280_v27 = vmul.f32 %v584_v13, %v279_v23 }
  0x52   : > { %v290_v28 = vmul.f32 %v586_v14, %v289_v24 }
  0x53   : > { %v284_v31 = vsel %vm283_vm4, %v584_v13, %v280_v27 }
  0x54   : > { %v294_v32 = vsel %vm293_vm5, %v586_v14, %v290_v28  ;;  %v311_v33 = vmul.f32 %v303_v29, %v284_v31  ;;  %v313_v46 = vmul.f32 %v305_v40, %v284_v31  ;;  %v315_v54 = vmul.f32 %v307_v48, %v284_v31 }
  0x55   : > { %v312_v34 = vmul.f32 %v304_v30, %v294_v32  ;;  %v314_v47 = vmul.f32 %v306_v41, %v294_v32  ;;  %v316_v55 = vmul.f32 %v308_v49, %v294_v32 }
  0x7f   : > { %v350_v35 = vpop.permute.xlu2 %349 }
  0x87   : > { %v355_v56 = vpop.permute.xlu2 %354 }
  0x96   : > { %v332_v36 = vpop.permute.xlu1 %331 }
  0x97   : > { %v322_v37 = vpop.permute.xlu0 %321  ;;  %v343_v63 = vmul.f32 %v332_v36, %v315_v54  ;;  %v344_v0 = vmul.f32 %v332_v36, %v316_v55 }
  0x98   : > { %v339_v38 = vmul.f32 %v322_v37, %v311_v33  ;;  %v340_v39 = vmul.f32 %v322_v37, %v312_v34 }
  0x9a   : > { %v367_v42 = vadd.f32 %v350_v35, %v339_v38  ;;  %v368_v43 = vadd.f32 %v350_v35, %v340_v39 }
  0x9c   : > { %v375_v44 = vadd.f32 %v367_v42, %v837_v9  ;;  %v376_v45 = vadd.f32 %v368_v43, %v840_v10  ;;  %v309_v9 = vsub.f32 %v872_v25, %v884_v60  ;;  %v310_v10 = vsub.f32 %v875_v26, %v886_v62 }
  0x9e   : > { %383 = vst [vmem:[%s908_s22] sm:$0xff] %v375_v44  ;;  %v337_v50 = vpop.permute.xlu1 %336  ;;  %v317_v57 = vmul.f32 %v309_v9, %v284_v31  ;;  %v318_v58 = vmul.f32 %v310_v10, %v294_v32 }
  0x9f   : > { %384 = vst [vmem:[%s908_s22 + $0x8] sm:$0xff] %v376_v45  ;;  %v327_v51 = vpop.permute.xlu0 %326 }
  0xa0   : > { %v341_v52 = vmul.f32 %v327_v51, %v313_v46  ;;  %v342_v53 = vmul.f32 %v327_v51, %v314_v47  ;;  %v345_v1 = vmul.f32 %v337_v50, %v317_v57  ;;  %v346_v2 = vmul.f32 %v337_v50, %v318_v58 }
  0xa2   : > { %v369_v59 = vadd.f32 %v355_v56, %v341_v52  ;;  %v370_v61 = vadd.f32 %v355_v56, %v342_v53 }
  0xa4   : > { %v377_v60 = vadd.f32 %v369_v59, %v843_v11  ;;  %v378_v62 = vadd.f32 %v370_v61, %v846_v12 }
  0xa6   : > { %385 = vst [vmem:[%s908_s22 + $0x10] sm:$0xff] %v377_v60  ;;  %v365_v3 = vpop.permute.xlu1 %364 }
  0xa7   : > { %386 = vst [vmem:[%s908_s22 + $0x18] sm:$0xff] %v378_v62  ;;  %v360_v4 = vpop.permute.xlu0 %359  ;;  %v373_v5 = vadd.f32 %v365_v3, %v345_v1  ;;  %v374_v11 = vadd.f32 %v365_v3, %v346_v2 }
  0xa8   : > { %v371_v12 = vadd.f32 %v360_v4, %v343_v63  ;;  %v372_v6 = vadd.f32 %v360_v4, %v344_v0 }
  0xa9   : > { %v381_v7 = vadd.f32 %v373_v5, %v872_v25  ;;  %v382_v8 = vadd.f32 %v374_v11, %v875_v26 }
  0xaa   : > { %v379_v13 = vadd.f32 %v371_v12, %v857_v17  ;;  %v380_v14 = vadd.f32 %v372_v6, %v860_v18 }
  0xab   : > { %389 = vst [vmem:[%s908_s22 + $0x30] sm:$0xff] %v381_v7 }
  0xac   : > { %390 = vst [vmem:[%s908_s22 + $0x38] sm:$0xff] %v382_v8 }
  0xad   : > { %387 = vst [vmem:[%s908_s22 + $0x20] sm:$0xff] %v379_v13 }
  0xae   : > { %388 = vst [vmem:[%s908_s22 + $0x28] sm:$0xff] %v380_v14 }
  0xaf   : > { %644 = shalt.err (!%p641_p13)
}
  0xb0   : > { %s704_s19 = smov 256   ;;  %s705_s28 = smov 16  }
  0xb1   : > { %515 = dma.vmem_to_hbm [thread:$0]  (%p777_p9), %s407_s15, 1024, %s409_s24, %s392_s6, %s704_s19, %s704_s19, %s705_s28  }
  0xb2 PF: > { %s423_s29 = sand.u32 1, %s679_s12   ;;  %p522_p0 = pnand %p499_p12, %p784_p11 }
  0xb3   : > { %s424_s22 = scalar_lea.sflag [#allocation4], %s423_s29 }
  0xb4   : > { %p523_p1 = pneg %p522_p0 }
  0xb6   : > { %674 = dma.done.wait (%p523_p1), %s424_s22, 1024  }
  0xb7   : > { %676 = vsyncadd (%p523_p1), %s424_s22, 4294966272  ;;  %s19_s17 = sadd.s32 1, %s699_s17   ;;  %s975_s12 = smov %s683_s13 }
  0xb8   : > { %p16_p2 = scmp.ge.s32.totalorder %s19_s17, 4   ;;  %s976_s13 = smov %s687_s14 }
  0xb9   : > { %s977_s14 = smov %s782_s26  ;;  %s978_s15 = smov %s695_s16 }
  0xba   : > { %s979_s16 = smov %s981_s20  ;;  %18 = sbr.rel (!%p16_p2) target bundleno = 6 (0x6), region = 77 }
  0xbf   :  { %430 = vsyncpa [#allocation3], 1 }
  0xc0   :  { %432 = vsyncpa [#allocation3 + $0x1], 1 }
  0xc1   :  { %433 = vsyncpa [#allocation4], 1 }
  0xc2   :  { %435 = vsyncpa [#allocation4 + $0x1], 1 }

</bundles_post_ra>
